<compile_context>
chip_gen: v5e
topology: v5e:2x2
jax: 0.10.0
libtpu: 0.0.40
codegen_flags: <defaults>
</compile_context>

<pallas_src>
import jax
import jax.numpy as jnp
from jax.experimental import pallas as pl
from jax.experimental.pallas import tpu as pltpu


def _round_up(x, n):
    return ((x + n - 1) // n) * n


def _vmem_capacity_bytes():
    """Physical per-core VMEM; conservative 64 MiB fallback (v7x size)."""
    try:
        info = pltpu.get_tpu_info()
        for name in ("vmem_capacity_bytes", "vmem_bytes"):
            cap = getattr(info, name, None)
            if cap:
                return int(cap)
    except Exception:
        pass
    return 64 * 1024 * 1024


# --------------------------------------------------------------------------
# Kernels.  Grid is (row_tiles, d_ffn_tiles); the d_ffn (reduction) axis is
# last and marked "arbitrary"; x and the output block are resident across it.
# --------------------------------------------------------------------------
def _ffn_kernel_single(x_ref, w1_ref, w2_ref, o_ref):
    # Reduction axis has extent 1 (weights fully resident): no accumulator.
    x = x_ref[...].astype(w1_ref.dtype)
    h = jnp.maximum(jnp.dot(x, w1_ref[...], preferred_element_type=jnp.float32), 0.0)
    # TODO(synk): training-mode dropout (p > 0) not implemented; inference identity.
    o_ref[...] = jnp.dot(h.astype(w2_ref.dtype), w2_ref[...],
                         preferred_element_type=jnp.float32).astype(o_ref.dtype)


def _ffn_kernel_inplace(x_ref, w1_ref, w2_ref, o_ref):
    # n_k > 1, f32 output: accumulate directly into the resident output block
    # (saves a tile_m x d_model_p f32 scratch -> VMEM headroom on v7x).
    k = pl.program_id(1)

    @pl.when(k == 0)
    def _():
        o_ref[...] = jnp.zeros_like(o_ref)

    x = x_ref[...].astype(w1_ref.dtype)
    h = jnp.maximum(jnp.dot(x, w1_ref[...], preferred_element_type=jnp.float32), 0.0)
    o_ref[...] += jnp.dot(h.astype(w2_ref.dtype), w2_ref[...],
                          preferred_element_type=jnp.float32)


def _ffn_kernel_acc(x_ref, w1_ref, w2_ref, o_ref, acc_ref):
    # n_k > 1, non-f32 output: f32 VMEM accumulator, cast on the last k step.
    k = pl.program_id(1)

    @pl.when(k == 0)
    def _():
        acc_ref[...] = jnp.zeros_like(acc_ref)

    x = x_ref[...].astype(w1_ref.dtype)
    h = jnp.maximum(jnp.dot(x, w1_ref[...], preferred_element_type=jnp.float32), 0.0)
    acc_ref[...] += jnp.dot(h.astype(w2_ref.dtype), w2_ref[...],
                            preferred_element_type=jnp.float32)

    @pl.when(k == pl.num_programs(1) - 1)
    def _():
        o_ref[...] = acc_ref[...].astype(o_ref.dtype)


# --------------------------------------------------------------------------
# Wrapper: pad/cast weights once at init, return a jitted forward(x).
# --------------------------------------------------------------------------
def make_poswise_ffn(w1, w2, *, compute_dtype=None, tile_f_target=512,
                     weights_resident=None, vmem_cap=None):
    """w1: [d_model, d_ffn], w2: [d_ffn, d_model] (transposed vs nn.Linear.weight).

    compute_dtype: if set (e.g. jnp.bfloat16), x/W1/W2 go through the MXU in that
    dtype with f32 accumulation — a deliberate precision tradeoff for speed.
    """
    d_model, d_ffn = w1.shape
    assert w2.shape == (d_ffn, d_model)
    if vmem_cap is None:
        vmem_cap = _vmem_capacity_bytes()

    w_dtype = jnp.dtype(compute_dtype) if compute_dtype is not None else jnp.dtype(w1.dtype)
    w_isz = w_dtype.itemsize

    d_model_p = _round_up(d_model, 128)
    d_ffn_p = _round_up(d_ffn, 128)   # pad to 128, NOT to tile_f

    # --- weights-resident fast path decision (counts double buffers) --------
    resident_bytes = 2 * 2 * d_model_p * d_ffn_p * w_isz
    if weights_resident is None:
        weights_resident = resident_bytes <= int(0.55 * vmem_cap)

    if weights_resident:
        tile_f = d_ffn_p
    else:
        # largest 128-multiple divisor of d_ffn_p that is <= tile_f_target
        n128 = d_ffn_p // 128
        tile_f = 128
        for cand in range(min(n128, max(1, tile_f_target // 128)), 0, -1):
            if n128 % cand == 0:
                tile_f = cand * 128
                break
    n_k = d_ffn_p // tile_f

    # --- pad + cast weights ONCE (init time, not in the per-call hot path) --
    w1p = w1
    w2p = w2
    if d_model_p != d_model or d_ffn_p != d_ffn:
        w1p = jnp.pad(w1p, ((0, d_model_p - d_model), (0, d_ffn_p - d_ffn)))
        w2p = jnp.pad(w2p, ((0, d_ffn_p - d_ffn), (0, d_model_p - d_model)))
    w1p = w1p.astype(w_dtype)
    w2p = w2p.astype(w_dtype)

    tile_m_cap = 1024 if vmem_cap > (96 << 20) else 512   # v5e/v6e vs v7x

    def forward(x):
        b, s, dm = x.shape
        assert dm == d_model
        m = b * s
        out_dtype = x.dtype
        x_isz = jnp.dtype(x.dtype).itemsize
        out_isz = jnp.dtype(out_dtype).itemsize

        use_acc_scratch = (n_k > 1) and (jnp.dtype(out_dtype) != jnp.float32)

        # --- tile_m from a tightened VMEM budget -----------------------------
        budget = int(0.7 * vmem_cap) - (4 << 20)            # compiler scratch headroom
        fixed = 4 * d_model_p * tile_f * w_isz              # W1 + W2, double-buffered
        per_m = (d_model_p * (2 * x_isz + 2 * out_isz + (4 if use_acc_scratch else 0))
                 + tile_f * (4 + w_isz))                    # f32 h + compute-dtype copy
        tile_m = (budget - fixed) // per_m if budget > fixed else 8
        tile_m = max(8, min(tile_m_cap, int(tile_m)) // 8 * 8)
        tile_m = min(tile_m, _round_up(m, 8))
        if weights_resident and m > 8 and _round_up(m, 8) <= tile_m:
            # split rows so the "parallel" axis can feed both TensorCores
            tile_m = max(8, _round_up((m + 1) // 2, 8))
        m_p = _round_up(m, tile_m)
        grid = (m_p // tile_m, n_k)

        # --- pad x only when actually needed ---------------------------------
        x2d = x.reshape(m, d_model)
        if m_p != m or d_model_p != d_model:
            x2d = jnp.pad(x2d, ((0, m_p - m), (0, d_model_p - d_model)))

        # --- kernel / scratch selection --------------------------------------
        if n_k == 1:
            kernel, scratch = _ffn_kernel_single, []
        elif use_acc_scratch:
            kernel = _ffn_kernel_acc
            scratch = [pltpu.VMEM((tile_m, d_model_p), jnp.float32)]
        else:
            kernel, scratch = _ffn_kernel_inplace, []

        # --- VMEM limit: tightened estimate, clamped to physical capacity ----
        est = (2 * tile_m * d_model_p * (x_isz + out_isz)
               + 4 * d_model_p * tile_f * w_isz
               + (tile_m * d_model_p * 4 if use_acc_scratch else 0)
               + tile_m * tile_f * (4 + w_isz))
        vmem_limit = int(est * 1.3) + (4 << 20)
        vmem_limit = max(16 << 20, min(vmem_limit, vmem_cap - (2 << 20)))

        out2d = pl.pallas_call(
            kernel,
            out_shape=jax.ShapeDtypeStruct((m_p, d_model_p), out_dtype),
            grid_spec=pltpu.PrefetchScalarGridSpec(
                num_scalar_prefetch=0,
                grid=grid,
                in_specs=[
                    pl.BlockSpec((tile_m, d_model_p), lambda i, k: (i, 0)),
                    pl.BlockSpec((d_model_p, tile_f), lambda i, k: (0, k)),
                    pl.BlockSpec((tile_f, d_model_p), lambda i, k: (k, 0)),
                ],
                out_specs=pl.BlockSpec((tile_m, d_model_p), lambda i, k: (i, 0)),
                scratch_shapes=scratch,
            ),
            compiler_params=pltpu.CompilerParams(
                dimension_semantics=("parallel", "arbitrary"),
                vmem_limit_bytes=vmem_limit,
            ),
        )(x2d, w1p, w2p)

        if m_p != m or d_model_p != d_model:
            out2d = out2d[:m, :d_model]
        return out2d.reshape(b, s, d_model)

    return jax.jit(forward)


def poswise_ffn(x, w1, w2, **kwargs):
    """One-shot convenience wrapper (pads weights on every call; prefer
    make_poswise_ffn for repeated use)."""
    return make_poswise_ffn(w1, w2, **kwargs)(x)


if __name__ == "__main__":
    batch, seq_len, d_model, d_ffn = 2, 8, 32, 64
    key = jax.random.PRNGKey(0)
    kx, k1, k2, k3, k4 = jax.random.split(key, 5)

    x = jax.random.normal(kx, (batch, seq_len, d_model), dtype=jnp.float32)
    # nn.Linear weight is [out, in]; we keep the transposed layout so the
    # kernel computes relu(x @ W1) @ W2 with plain row-major matmuls.
    w1 = jax.random.normal(k1, (d_model, d_ffn), dtype=jnp.float32) * (1.0 / d_model ** 0.5)
    w2 = jax.random.normal(k2, (d_ffn, d_model), dtype=jnp.float32) * (1.0 / d_ffn ** 0.5)

    ref = (jnp.maximum(x.reshape(-1, d_model) @ w1, 0.0) @ w2)
    ref = ref.reshape(batch, seq_len, d_model)

    # 1) f32, weights-resident fast path (single reduction step): tight check.
    ffn_f32 = make_poswise_ffn(w1, w2)
    out = jax.block_until_ready(ffn_f32(x))
    assert out.shape == (batch, seq_len, d_model)
    assert jnp.allclose(out, ref, atol=1e-5, rtol=1e-5)

    # 2) streamed-weights path (d_ffn grid axis > 1) exercising the accumulator
    #    kernels: use a wider FFN so d_ffn_p // tile_f == 2.
    d_ffn2 = 256
    w1b = jax.random.normal(k3, (d_model, d_ffn2), dtype=jnp.float32) * (1.0 / d_model ** 0.5)
    w2b = jax.random.normal(k4, (d_ffn2, d_model), dtype=jnp.float32) * (1.0 / d_ffn2 ** 0.5)
    ref2 = (jnp.maximum(x.reshape(-1, d_model) @ w1b, 0.0) @ w2b)
    ref2 = ref2.reshape(batch, seq_len, d_model)

    # 2a) f32 output -> accumulate in-place into the resident output block.
    ffn_stream_f32 = make_poswise_ffn(w1b, w2b, weights_resident=False, tile_f_target=128)
    out_s = jax.block_until_ready(ffn_stream_f32(x))
    assert jnp.allclose(out_s, ref2, atol=1e-5, rtol=1e-5)

    # 2b) bf16 end-to-end (MXU-native dtype) -> f32 scratch accumulator; loose check.
    ffn_stream_bf16 = make_poswise_ffn(w1b.astype(jnp.bfloat16), w2b.astype(jnp.bfloat16),
                                       weights_resident=False, tile_f_target=128)
    out_b = jax.block_until_ready(ffn_stream_bf16(x.astype(jnp.bfloat16)))
    assert jnp.allclose(out_b.astype(jnp.float32), ref2, atol=1e-1, rtol=5e-2)

    # 3) f32 inputs with bf16 MXU compute (deliberate precision tradeoff): loose check.
    ffn_mixed = make_poswise_ffn(w1, w2, compute_dtype=jnp.bfloat16)
    out_m = jax.block_until_ready(ffn_mixed(x))
    assert jnp.allclose(out_m, ref, atol=1e-1, rtol=5e-2)

    print("KERNEL_OK")
</pallas_src>

<mosaic_0001>
module attributes {stable_mosaic.version = 11 : i64} {
  func.func @_ffn_kernel_single(%arg0: i32, %arg1: i32, %arg2: memref<8x128xf32, #tpu.memory_space<vmem>>, %arg3: memref<128x128xf32, #tpu.memory_space<vmem>>, %arg4: memref<128x128xf32, #tpu.memory_space<vmem>>, %arg5: memref<8x128xf32, #tpu.memory_space<vmem>>) attributes {dimension_semantics = [#tpu.dimension_semantics<parallel>, #tpu.dimension_semantics<arbitrary>], iteration_bounds = array<i64: 2, 1>, scalar_prefetch = 0 : i64, scratch_operands = 0 : i64, tpu.core_type = #tpu.core_type<tc>, window_params = [{transform_indices = @transform_0, window_bounds = array<i64: 8, 128>}, {transform_indices = @transform_1, window_bounds = array<i64: 128, 128>}, {transform_indices = @transform_2, window_bounds = array<i64: 128, 128>}, {transform_indices = @transform_3, window_bounds = array<i64: 8, 128>}]} {
    %c0 = arith.constant 0 : index
    %c0_0 = arith.constant 0 : index
    %0 = vector.load %arg2[%c0, %c0_0] : memref<8x128xf32, #tpu.memory_space<vmem>>, vector<8x128xf32>
    %c0_1 = arith.constant 0 : index
    %c0_2 = arith.constant 0 : index
    %1 = vector.load %arg3[%c0_1, %c0_2] : memref<128x128xf32, #tpu.memory_space<vmem>>, vector<128x128xf32>
    %cst = arith.constant dense<0.000000e+00> : vector<8x128xf32>
    %2 = tpu.matmul %0, %1, %cst {dimension_numbers = #tpu.dot_dimension_numbers<[1], [0], [0], [1], [0, 0, 1, 1], [], []>} : vector<8x128xf32>, vector<128x128xf32>, vector<8x128xf32> -> vector<8x128xf32>
    %cst_3 = arith.constant 0.000000e+00 : f32
    %3 = vector.broadcast %cst_3 : f32 to vector<8x128xf32>
    %4 = arith.maximumf %2, %3 : vector<8x128xf32>
    %c0_4 = arith.constant 0 : index
    %c0_5 = arith.constant 0 : index
    %5 = vector.load %arg4[%c0_4, %c0_5] : memref<128x128xf32, #tpu.memory_space<vmem>>, vector<128x128xf32>
    %cst_6 = arith.constant dense<0.000000e+00> : vector<8x128xf32>
    %6 = tpu.matmul %4, %5, %cst_6 {dimension_numbers = #tpu.dot_dimension_numbers<[1], [0], [0], [1], [0, 0, 1, 1], [], []>} : vector<8x128xf32>, vector<128x128xf32>, vector<8x128xf32> -> vector<8x128xf32>
    %c0_7 = arith.constant 0 : index
    %c0_8 = arith.constant 0 : index
    %7 = vector.load %arg5[%c0_7, %c0_8] : memref<8x128xf32, #tpu.memory_space<vmem>>, vector<8x128xf32>
    tpu.vector_store %arg5[%c0_7, %c0_8], %6 {strides = array<i32>} : memref<8x128xf32, #tpu.memory_space<vmem>>, vector<8x128xf32>,
    return
  }
  func.func @transform_0(%arg0: i32, %arg1: i32) -> (i32, i32) {
    %c0_i32 = arith.constant 0 : i32
    %c0_i32_0 = arith.constant 0 : i32
    return %arg0, %c0_i32 : i32, i32
  }
  func.func @transform_1(%arg0: i32, %arg1: i32) -> (i32, i32) {
    %c0_i32 = arith.constant 0 : i32
    %c0_i32_0 = arith.constant 0 : i32
    return %c0_i32, %arg1 : i32, i32
  }
  func.func @transform_2(%arg0: i32, %arg1: i32) -> (i32, i32) {
    %c0_i32 = arith.constant 0 : i32
    %c0_i32_0 = arith.constant 0 : i32
    return %arg1, %c0_i32 : i32, i32
  }
  func.func @transform_3(%arg0: i32, %arg1: i32) -> (i32, i32) {
    %c0_i32 = arith.constant 0 : i32
    %c0_i32_0 = arith.constant 0 : i32
    return %arg0, %c0_i32 : i32, i32
  }
}

</mosaic_0001>

<bundles_post_ra>
// kernel: forward.1
= control target key start
LH: loop header
LB: loop body
LE: loop exit
PB: predicated region body
PF: predicated region fallthrough
CT: control target
= control target key end

     0   :  { %8 = vsyncpa [#allocation3], 0  ;;  %s636_s0 = inlined_call_operand.vmem [shape: f32[16,128], index: 0, kind: input, shape index: {}]   ;;  %s637_s1 = inlined_call_operand.hbm [shape: f32[128,128], index: 1, kind: input, shape index: {}]   ;;  %s638_s2 = inlined_call_operand.hbm [shape: f32[128,128], index: 2, kind: input, shape index: {}]   ;;  %s639_s3 = inlined_call_operand.vmem [shape: f32[16,128], index: 3, kind: output, shape index: {}]  }
   0x1   :  { %9 = vsyncpa [#allocation5], 0  ;;  %s567_s12 = smov 0   ;;  %s569_s13 = smov 0  }
   0x2   :  { %s571_s14 = smov 0  }
   0x3 LB: > { %s391_s15 = sadd.s32 4294967295, %s541_s14   ;;  %s27_s16 = sadd.s32 1, %s537_s13  ;;  %s541_s14 = sphi %s571_s14, %s15_s14   ;;  %s537_s13 = sphi %s569_s13, %s643_s13   ;;  %s533_s12 = sphi %s567_s12, %s642_s12  }
   0x4   : > { %p29_p0 = scmp.ge.s32.totalorder %s27_s16, 2  ;;  %p393_p1 = scmp.ge.s32.totalorder %s541_s14, 1 }
   0x5   : > { %p136_p2 = scmp.lt.s32.totalorder %s541_s14, 3  ;;  %p592_p4 = scmp.eq.s32.totalorder %s391_s15, 0 }
   0x6   : > { %s645_s16 = smov (%p29_p0, %s27_s16), 0  ;;  %s149_s21 = sshll.u32 %s637_s1, 4  ;;  %s150_s21 = int_to_ptr.hbm [resolvable:$true] %s149_s21 }
   0x7   : > { %p588_p3 = pnand %p393_p1, %p136_p2  ;;  %s543_s22 = smov [#allocation2]  }
   0x8   : > { %s151_s23 = sshll.u32 %s543_s22, 4  ;;  %s166_s26 = sshll.u32 %s638_s2, 4  ;;  %s152_s23 = int_to_ptr.vmem [resolvable:$true] %s151_s23  ;;  %s167_s26 = int_to_ptr.hbm [resolvable:$true] %s166_s26 }
   0x9   : > { %p412_p5 = pneg %p588_p3  ;;  %s544_s27 = smov 128  }
   0xa   : > { %s545_s28 = smov 8   ;;  %s546_s29 = smov [#allocation4]  }
   0xb   : > { %p413_p6 = pnand %p592_p4, %p412_p5  ;;  %s168_s30 = sshll.u32 %s546_s29, 4  ;;  %s169_s30 = int_to_ptr.vmem [resolvable:$true] %s168_s30 }
   0xc   : > { %191 = sbr.rel (%p588_p3) target bundleno = 307 (0x133), region = 32 }
   0xd   : > { %415 = dma.hbm_to_vmem [thread:$0]  (!%p413_p6), %s150_s21, 2048, %s152_s23, [#allocation3], %s544_s27, %s544_s27, %s545_s28  }
   0xe   : > { %418 = dma.hbm_to_vmem [thread:$0]  (!%p413_p6), %s167_s26, 2048, %s169_s30, [#allocation5], %s544_s27, %s544_s27, %s545_s28  }
  0x11   : > { %524 = dma.done.wait (%p592_p4), [#allocation3], 2048  }
  0x12   : > { %526 = vsyncadd (%p592_p4), [#allocation3], 4294965248 }
  0x13   : > { %528 = dma.done.wait (%p592_p4), [#allocation5], 2048  }
  0x14   : > { %530 = vsyncadd (%p592_p4), [#allocation5], 4294965248  ;;  %v244_v0 = vld [vmem:[#allocation2 + $0x78] sm:$0xff]  ;;  %v243_v1 = vld [vmem:[#allocation2 + $0x70] sm:$0xff]  ;;  %p219_p7 = scmp.lt.s32.totalorder %s533_s12, 1 }
  0x15   : > { %245 = vmatpush.msra.mxu0 %v244_v0  ;;  %v242_v2 = vld [vmem:[#allocation2 + $0x68] sm:$0xff]  ;;  %v241_v3 = vld [vmem:[#allocation2 + $0x60] sm:$0xff]  ;;  %v281_v4 = vld [vmem:[#allocation4 + $0x78] sm:$0xff] }
  0x16   : > { %v240_v5 = vld [vmem:[#allocation2 + $0x58] sm:$0xff]  ;;  %282 = vmatpush.msra.mxu1 %v281_v4  ;;  %v280_v6 = vld [vmem:[#allocation4 + $0x70] sm:$0xff]  ;;  %v279_v7 = vld [vmem:[#allocation4 + $0x68] sm:$0xff]  ;;  %s647_s12 = smov (!%p219_p7, %s533_s12), 1 }
  0x17   : > { %246 = vmatpush.msra.mxu0 %v243_v1  ;;  %v239_v8 = vld [vmem:[#allocation2 + $0x50] sm:$0xff]  ;;  %v278_v9 = vld [vmem:[#allocation4 + $0x60] sm:$0xff]  ;;  %v238_v10 = vld [vmem:[#allocation2 + $0x48] sm:$0xff]  ;;  %s400_s4 = sshll.u32 %s647_s12, 3 }
  0x18   : > { %283 = vmatpush.msra.mxu1 %v280_v6  ;;  %v277_v11 = vld [vmem:[#allocation4 + $0x58] sm:$0xff]  ;;  %v237_v12 = vld [vmem:[#allocation2 + $0x40] sm:$0xff]  ;;  %v276_v13 = vld [vmem:[#allocation4 + $0x50] sm:$0xff]  ;;  %s222_s7 = scalar_lea.vmem %s636_s0, %s400_s4  ;;  %s227_s10 = scalar_lea.vmem %s639_s3, %s400_s4 }
  0x19   : > { %247 = vmatpush.msra.mxu0 %v242_v2  ;;  %v236_v14 = vld [vmem:[#allocation2 + $0x38] sm:$0xff]  ;;  %v275_v15 = vld [vmem:[#allocation4 + $0x48] sm:$0xff]  ;;  %v235_v16 = vld [vmem:[#allocation2 + $0x30] sm:$0xff] }
  0x1a   : > { %284 = vmatpush.msra.mxu1 %v279_v7  ;;  %v274_v17 = vld [vmem:[#allocation4 + $0x40] sm:$0xff]  ;;  %v234_v18 = vld [vmem:[#allocation2 + $0x28] sm:$0xff]  ;;  %v273_v19 = vld [vmem:[#allocation4 + $0x38] sm:$0xff] }
  0x1b   : > { %248 = vmatpush.msra.mxu0 %v241_v3  ;;  %v233_v20 = vld [vmem:[#allocation2 + $0x20] sm:$0xff]  ;;  %v272_v21 = vld [vmem:[#allocation4 + $0x30] sm:$0xff]  ;;  %v232_v22 = vld [vmem:[#allocation2 + $0x18] sm:$0xff] }
  0x1c   : > { %285 = vmatpush.msra.mxu1 %v278_v9  ;;  %v271_v23 = vld [vmem:[#allocation4 + $0x28] sm:$0xff]  ;;  %v231_v24 = vld [vmem:[#allocation2 + $0x10] sm:$0xff]  ;;  %v270_v25 = vld [vmem:[#allocation4 + $0x20] sm:$0xff] }
  0x1d   : > { %249 = vmatpush.msra.mxu0 %v240_v5  ;;  %v230_v26 = vld [vmem:[#allocation2 + $0x8] sm:$0xff]  ;;  %v269_v27 = vld [vmem:[#allocation4 + $0x18] sm:$0xff]  ;;  %v229_v28 = vld [vmem:[#allocation2] sm:$0xff] }
  0x1e   : > { %286 = vmatpush.msra.mxu1 %v277_v11  ;;  %v228_v29 = vld [vmem:[%s222_s7] sm:$0xff]  ;;  %v268_v30 = vld [vmem:[#allocation4 + $0x10] sm:$0xff]  ;;  %v267_v31 = vld [vmem:[#allocation4 + $0x8] sm:$0xff] }
  0x1f   : > { %250 = vmatpush.msra.mxu0 %v239_v8  ;;  %v266_v32 = vld [vmem:[#allocation4] sm:$0xff] }
  0x20   : > { %287 = vmatpush.msra.mxu1 %v276_v13 }
  0x21   : > { %251 = vmatpush.msra.mxu0 %v238_v10 }
  0x22   : > { %288 = vmatpush.msra.mxu1 %v275_v15 }
  0x23   : > { %252 = vmatpush.msra.mxu0 %v237_v12 }
  0x24   : > { %289 = vmatpush.msra.mxu1 %v274_v17 }
  0x25   : > { %253 = vmatpush.msra.mxu0 %v236_v14 }
  0x26   : > { %290 = vmatpush.msra.mxu1 %v273_v19 }
  0x27   : > { %254 = vmatpush.msra.mxu0 %v235_v16 }
  0x28   : > { %291 = vmatpush.msra.mxu1 %v272_v21 }
  0x29   : > { %255 = vmatpush.msra.mxu0 %v234_v18 }
  0x2a   : > { %292 = vmatpush.msra.mxu1 %v271_v23 }
  0x2b   : > { %256 = vmatpush.msra.mxu0 %v233_v20 }
  0x2c   : > { %293 = vmatpush.msra.mxu1 %v270_v25 }
  0x2d   : > { %257 = vmatpush.msra.mxu0 %v232_v22 }
  0x2e   : > { %294 = vmatpush.msra.mxu1 %v269_v27 }
  0x2f   : > { %258 = vmatpush.msra.mxu0 %v231_v24 }
  0x30   : > { %295 = vmatpush.msra.mxu1 %v268_v30 }
  0x31   : > { %259 = vmatpush.msra.mxu0 %v230_v26 }
  0x32   : > { %296 = vmatpush.msra.mxu1 %v267_v31 }
  0x33   : > { %260 = vmatpush.msra.mxu0 %v229_v28 }
  0x34   : > { %261 = vmatmul.f32.vlgmr.msra.gmra.mxu0 %v228_v29  ;;  %297 = vmatpush.msra.mxu1 %v266_v32 }
  0xb1   : > { %v262_v33 = vpop.f32.mrf.mxu0 }
  0xb2   : > { %v265_v34 = vmax.f32 %v262_v33, 0.0 }
  0xb4   : > { %298 = vmatmul.f32.vlgmr.msra.gmra.mxu1 %v265_v34 }
 0x131   : > { %v299_v35 = vpop.f32.mrf.mxu1 }
 0x132   : > { %302 = vst [vmem:[%s227_s10] sm:$0xff] %v299_v35 }
 0x133 PF: > { %s15_s14 = sadd.s32 1, %s541_s14   ;;  %s642_s12 = smov %s537_s13 }
 0x134   : > { %p12_p8 = scmp.ge.s32.totalorder %s15_s14, 4   ;;  %s643_s13 = smov %s645_s16 }
 0x136   :  { %14 = sbr.rel (!%p12_p8) target bundleno = 3 (0x3), region = 73 }
 0x13b   :  { %322 = vsyncpa [#allocation3], 1 }
 0x13c   :  { %324 = vsyncpa [#allocation3 + $0x1], 1 }
 0x13d   :  { %325 = vsyncpa [#allocation5], 1 }

</bundles_post_ra>
